<compile_context>
chip_gen: v7x
topology: tpu7x:2x2x1
jax: 0.10.0
libtpu: 0.0.40
codegen_flags: <defaults>
</compile_context>

<pallas_src>
import jax
import jax.numpy as jnp
from jax import lax
from jax.experimental import pallas as pl
from jax.experimental.pallas import tpu as pltpu

_MIB = 1 << 20


def _linear_kernel(x_ref, w_ref, b_ref, o_ref, acc_ref):
    # x_ref: (tm, tk)   w_ref: (tn, tk) [native nn.Linear layout]
    # b_ref: (1, tn)    o_ref: (tm, tn) acc_ref: (tm, tn) f32 scratch
    k = pl.program_id(2)

    @pl.when(k == 0)
    def _():
        # Initialize the accumulator with the broadcast bias: removes one
        # full-tile VPU add and an extra accumulator read from the epilogue.
        acc_ref[...] = jnp.broadcast_to(
            b_ref[...].astype(jnp.float32), acc_ref.shape)

    # Contract over in_features (last dim of both operands) on the MXU,
    # accumulating in f32.  Transposed-RHS contraction — same pattern as the
    # stock Pallas attention/matmul kernels — so W stays in its native HBM
    # layout and is read exactly once per (i, j) pass.
    acc_ref[...] += lax.dot_general(
        x_ref[...], w_ref[...],
        dimension_numbers=(((1,), (1,)), ((), ())),
        preferred_element_type=jnp.float32,
    )

    @pl.when(k == pl.num_programs(2) - 1)
    def _():
        o_ref[...] = acc_ref[...].astype(o_ref.dtype)


def _round_up(x, m):
    return ((x + m - 1) // m) * m


def _axis_tile(dim, target, align):
    """Pick (tile, padded_dim) for one axis.

    Small dims use the full dimension (always a legal block).  Large dims use
    an `align`-multiple tile <= target, and the caller zero-pads the array to
    a tile multiple — never falls back to a full-dim mega-block."""
    if dim <= target:
        return dim, dim
    tile = max(align, (target // align) * align)
    return tile, _round_up(dim, tile)


def linear_forward(x, weight, bias, *, tm=512, tn=512, tk=1024,
                   compute_dtype=None):
    """y = x @ weight.T + bias.

    x: (B, in_f); weight: (out_f, in_f) (native nn.Linear layout);
    bias: (out_f,).  Returns (B, out_f) in x.dtype."""
    B, in_f = x.shape
    out_f, in_f_w = weight.shape
    assert in_f == in_f_w, "weight in_features mismatch"
    assert bias.shape == (out_f,)

    out_dtype = x.dtype

    # Optional reduced-precision MXU operands (f32 accumulation regardless).
    if compute_dtype is not None:
        x = x.astype(compute_dtype)
        weight = weight.astype(compute_dtype)

    # --- Tile selection: 128-aligned on every axis; pad awkward dims instead
    #     of ever degenerating to a full-dim block that could blow VMEM. ------
    tm, Bp = _axis_tile(B, tm, 128)
    tn, Np = _axis_tile(out_f, tn, 128)
    tk, Kp = _axis_tile(in_f, tk, 128)

    # Zero padding: padded K contributes 0 to the dot; padded N columns get
    # zero weight rows + zero bias; padded M rows / N cols are sliced off.
    if (Bp, Kp) != (B, in_f):
        x = jnp.pad(x, ((0, Bp - B), (0, Kp - in_f)))
    if (Np, Kp) != (out_f, in_f):
        weight = jnp.pad(weight, ((0, Np - out_f), (0, Kp - in_f)))
    b2d = bias.reshape(1, out_f).astype(jnp.float32)
    if Np != out_f:
        b2d = jnp.pad(b2d, ((0, 0), (0, Np - out_f)))

    grid = (Bp // tm, Np // tn, Kp // tk)

    in_bytes = jnp.dtype(x.dtype).itemsize
    out_bytes = jnp.dtype(out_dtype).itemsize
    # Double-buffered pipeline footprint + f32 accumulator + bias tile.
    footprint = (2 * (tm * tk + tn * tk) * in_bytes
                 + 2 * tm * tn * out_bytes
                 + 2 * tn * 4
                 + tm * tn * 4)
    # Explicit scoped-VMEM limit: >= 32 MiB (covers v5e's 16 MiB default),
    # capped at 60 MiB to stay inside v7x's 64 MiB physical VMEM.
    vmem_limit = int(min(max(32 * _MIB, footprint + 8 * _MIB), 60 * _MIB))

    cost = pl.CostEstimate(
        flops=2 * B * in_f * out_f,
        bytes_accessed=(B * in_f + out_f * in_f + out_f) * in_bytes
                       + B * out_f * out_bytes,
        transcendentals=0,
    )

    out = pl.pallas_call(
        _linear_kernel,
        out_shape=jax.ShapeDtypeStruct((Bp, Np), out_dtype),
        grid_spec=pltpu.PrefetchScalarGridSpec(
            num_scalar_prefetch=0,
            grid=grid,
            in_specs=[
                pl.BlockSpec((tm, tk), lambda i, j, k: (i, k)),   # x tile
                pl.BlockSpec((tn, tk), lambda i, j, k: (j, k)),   # W tile (native)
                pl.BlockSpec((1, tn), lambda i, j, k: (0, j)),    # bias tile (N only)
            ],
            out_specs=pl.BlockSpec((tm, tn), lambda i, j, k: (i, j)),
            scratch_shapes=[pltpu.VMEM((tm, tn), jnp.float32)],
        ),
        compiler_params=pltpu.CompilerParams(
            dimension_semantics=("parallel", "parallel", "arbitrary"),
            vmem_limit_bytes=vmem_limit,
        ),
        cost_estimate=cost,
    )(x, weight, b2d)

    if (Bp, Np) != (B, out_f):
        out = out[:B, :out_f]
    return out


def _init_linear(key, in_features, out_features):
    """Deterministic nn.Linear-style init (uniform +/- 1/sqrt(in_features))."""
    kw, kb = jax.random.split(key)
    bound = 1.0 / (in_features ** 0.5)
    weight = jax.random.uniform(
        kw, (out_features, in_features), minval=-bound, maxval=bound,
        dtype=jnp.float32)
    bias = jax.random.uniform(
        kb, (out_features,), minval=-bound, maxval=bound, dtype=jnp.float32)
    return weight, bias


if __name__ == "__main__":
    key = jax.random.PRNGKey(0)
    k1, k2, k3, k4 = jax.random.split(key, 4)

    # --- Test 1: small spec-consistent shapes (full-dim blocks, 1x1x1 grid;
    #             overhead-bound at this size, correctness check only). -------
    B, in_f, out_f = 8, 32, 16
    x = jax.random.normal(k1, (B, in_f), dtype=jnp.float32)
    w, b = _init_linear(k2, in_f, out_f)
    y = linear_forward(x, w, b)
    jax.block_until_ready(y)
    y_ref = x @ w.T + b
    assert y.shape == (B, out_f)
    assert jnp.allclose(y, y_ref, atol=1e-5, rtol=1e-5), "small-shape mismatch"

    # --- Test 2: awkward (non-divisible) shapes exercising padding, M/K
    #             tiling, K-accumulation, and bias-in-accumulator init. -------
    B2, in_f2, out_f2 = 520, 1152, 384
    x2 = jax.random.normal(k3, (B2, in_f2), dtype=jnp.float32)
    w2, b2 = _init_linear(k4, in_f2, out_f2)
    y2 = linear_forward(x2, w2, b2)       # padded to 1024x2048/384 -> grid (2,1,2)
    jax.block_until_ready(y2)
    y2_ref = x2 @ w2.T + b2
    assert y2.shape == (B2, out_f2)
    assert jnp.allclose(y2, y2_ref, atol=1e-4, rtol=1e-4), "tiled-shape mismatch"

    print("KERNEL_OK")
</pallas_src>

<mosaic_0001>
module attributes {stable_mosaic.version = 11 : i64} {
  func.func @_linear_kernel(%arg0: i32, %arg1: i32, %arg2: i32, %arg3: memref<8x32xf32, #tpu.memory_space<vmem>>, %arg4: memref<16x32xf32, #tpu.memory_space<vmem>>, %arg5: memref<1x16xf32, #tpu.memory_space<vmem>>, %arg6: memref<8x16xf32, #tpu.memory_space<vmem>>, %arg7: memref<8x16xf32, #tpu.memory_space<vmem>>) attributes {dimension_semantics = [#tpu.dimension_semantics<parallel>, #tpu.dimension_semantics<parallel>, #tpu.dimension_semantics<arbitrary>], iteration_bounds = array<i64: 1, 1, 1>, scalar_prefetch = 0 : i64, scratch_operands = 1 : i64, tpu.core_type = #tpu.core_type<tc>, window_params = [{transform_indices = @transform_0, window_bounds = array<i64: 8, 32>}, {transform_indices = @transform_1, window_bounds = array<i64: 16, 32>}, {transform_indices = @transform_2, window_bounds = array<i64: 1, 16>}, {transform_indices = @transform_3, window_bounds = array<i64: 8, 16>}]} {
    %c0_i32 = arith.constant 0 : i32
    %0 = arith.cmpi eq, %arg2, %c0_i32 : i32
    %1 = arith.extui %0 : i1 to i32
    %c0_i32_0 = arith.constant 0 : i32
    %2 = arith.cmpi ne, %1, %c0_i32_0 : i32
    scf.if %2 {
      %c0_10 = arith.constant 0 : index
      %c0_11 = arith.constant 0 : index
      %12 = vector.load %arg5[%c0_10, %c0_11] : memref<1x16xf32, #tpu.memory_space<vmem>>, vector<1x16xf32>
      %13 = vector.shape_cast %12 : vector<1x16xf32> to vector<1x16xf32>
      %14 = vector.broadcast %13 : vector<1x16xf32> to vector<8x16xf32>
      %c0_12 = arith.constant 0 : index
      %c0_13 = arith.constant 0 : index
      %15 = vector.load %arg7[%c0_12, %c0_13] : memref<8x16xf32, #tpu.memory_space<vmem>>, vector<8x16xf32>
      tpu.vector_store %arg7[%c0_12, %c0_13], %14 {strides = array<i32>} : memref<8x16xf32, #tpu.memory_space<vmem>>, vector<8x16xf32>,
    } else {
    }
    %c0 = arith.constant 0 : index
    %c0_1 = arith.constant 0 : index
    %3 = vector.load %arg7[%c0, %c0_1] : memref<8x16xf32, #tpu.memory_space<vmem>>, vector<8x16xf32>
    %c0_2 = arith.constant 0 : index
    %c0_3 = arith.constant 0 : index
    %4 = vector.load %arg3[%c0_2, %c0_3] : memref<8x32xf32, #tpu.memory_space<vmem>>, vector<8x32xf32>
    %c0_4 = arith.constant 0 : index
    %c0_5 = arith.constant 0 : index
    %5 = vector.load %arg4[%c0_4, %c0_5] : memref<16x32xf32, #tpu.memory_space<vmem>>, vector<16x32xf32>
    %cst = arith.constant dense<0.000000e+00> : vector<8x16xf32>
    %6 = tpu.matmul %4, %5, %cst {dimension_numbers = #tpu.dot_dimension_numbers<[1], [1], [0], [0], [0, 0, 1, 0], [], []>} : vector<8x32xf32>, vector<16x32xf32>, vector<8x16xf32> -> vector<8x16xf32>
    %7 = arith.addf %3, %6 : vector<8x16xf32>
    %c0_6 = arith.constant 0 : index
    %c0_7 = arith.constant 0 : index
    %8 = vector.load %arg7[%c0_6, %c0_7] : memref<8x16xf32, #tpu.memory_space<vmem>>, vector<8x16xf32>
    tpu.vector_store %arg7[%c0_6, %c0_7], %7 {strides = array<i32>} : memref<8x16xf32, #tpu.memory_space<vmem>>, vector<8x16xf32>,
    %c0_i32_8 = arith.constant 0 : i32
    %9 = arith.cmpi eq, %arg2, %c0_i32_8 : i32
    %10 = arith.extui %9 : i1 to i32
    %c0_i32_9 = arith.constant 0 : i32
    %11 = arith.cmpi ne, %10, %c0_i32_9 : i32
    scf.if %11 {
      %c0_10 = arith.constant 0 : index
      %c0_11 = arith.constant 0 : index
      %12 = vector.load %arg7[%c0_10, %c0_11] : memref<8x16xf32, #tpu.memory_space<vmem>>, vector<8x16xf32>
      %c0_12 = arith.constant 0 : index
      %c0_13 = arith.constant 0 : index
      %13 = vector.load %arg6[%c0_12, %c0_13] : memref<8x16xf32, #tpu.memory_space<vmem>>, vector<8x16xf32>
      tpu.vector_store %arg6[%c0_12, %c0_13], %12 {strides = array<i32>} : memref<8x16xf32, #tpu.memory_space<vmem>>, vector<8x16xf32>,
    } else {
    }
    return
  }
  func.func @transform_0(%arg0: i32, %arg1: i32, %arg2: i32) -> (i32, i32) {
    %c0_i32 = arith.constant 0 : i32
    return %arg0, %arg2 : i32, i32
  }
  func.func @transform_1(%arg0: i32, %arg1: i32, %arg2: i32) -> (i32, i32) {
    %c0_i32 = arith.constant 0 : i32
    return %arg1, %arg2 : i32, i32
  }
  func.func @transform_2(%arg0: i32, %arg1: i32, %arg2: i32) -> (i32, i32) {
    %c0_i32 = arith.constant 0 : i32
    %c0_i32_0 = arith.constant 0 : i32
    return %c0_i32, %arg1 : i32, i32
  }
  func.func @transform_3(%arg0: i32, %arg1: i32, %arg2: i32) -> (i32, i32) {
    %c0_i32 = arith.constant 0 : i32
    return %arg0, %arg1 : i32, i32
  }
}

</mosaic_0001>

<bundles_post_ra>
// kernel: tpu_custom_call.1
= control target key start
LH: loop header
LB: loop body
LE: loop exit
PB: predicated region body
PF: predicated region fallthrough
CT: control target
= control target key end

     0   :  { %8 = vsyncpa [#allocation4], 0  ;;  %s337_s0 = inlined_call_operand.hbm [shape: f32[8,32], index: 0, kind: input, shape index: {}]   ;;  %s338_s1 = inlined_call_operand.hbm [shape: f32[16,32], index: 1, kind: input, shape index: {}]   ;;  %s339_s2 = inlined_call_operand.vmem [shape: f32[1,16], index: 2, kind: input, shape index: {}]   ;;  %s340_s3 = inlined_call_operand.hbm [shape: f32[8,16], index: 3, kind: output, shape index: {}]  }
   0x1   :  { %9 = vsyncpa [#allocation7], 0 }
   0x2   :  { %10 = vsyncpa [#allocation5], 0  ;;  %s260_s12 = smov [#allocation3]   ;;  %s261_s14 = smov [#allocation6]  }
   0x3   :  { %s17_s13 = sshll.u32 %s260_s12, 4  ;;  %s26_s15 = sshll.u32 %s261_s14, 4  ;;  %s18_s13 = int_to_ptr.vmem [resolvable:$true] %s17_s13  ;;  %s288_s15 = int_to_ptr.vmem [resolvable:$true] %s26_s15 }
   0x4   :  { %s188_s18 = scalar_lea.hbm %s337_s0, 128 }
   0x5   :  { %p189_p0 = scmp.ne.s32.totalorder %s337_s0, %s188_s18  ;;  %p192_p1 = scmp.lt.u32.totalorder %s188_s18, %s337_s0 }
   0x7   :  { %p194_p2 = pnand %p192_p1, %p189_p0 }
   0x9   :  { %197 = shalt.err (!%p194_p2)
}
   0xa   :  { %s198_s23 = scalar_lea.vmem %s18_s13, 128  ;;  %p203_p4 = scmp.lt.s32.totalorder %s18_s13, %s18_s13 }
   0xb   :  { %p199_p3 = scmp.ne.s32.totalorder %s18_s13, %s198_s23  ;;  %p204_p5 = scmp.lt.s32.totalorder %s198_s23, %s198_s23 }
   0xd   :  { %p205_p6 = por %p204_p5, %p203_p4 }
   0xf   :  { %p206_p7 = pnand %p205_p6, %p199_p3 }
  0x11   :  { %209 = shalt.err (!%p206_p7)
}
  0x12   :  { %20 = dma.hbm_to_vmem [thread:$0]  %s337_s0, 128, %s18_s13, [#allocation4]  }
  0x13   :  { %s210_s28 = scalar_lea.hbm %s338_s1, 256 }
  0x14   :  { %p211_p8 = scmp.ne.s32.totalorder %s338_s1, %s210_s28  ;;  %p214_p9 = scmp.lt.u32.totalorder %s210_s28, %s338_s1 }
  0x16   :  { %p216_p10 = pnand %p214_p9, %p211_p8 }
  0x18   :  { %219 = shalt.err (!%p216_p10)
}
  0x19   :  { %s220_s6 = scalar_lea.vmem %s288_s15, 256  ;;  %p225_p12 = scmp.lt.s32.totalorder %s288_s15, %s288_s15 }
  0x1a   :  { %p221_p11 = scmp.ne.s32.totalorder %s288_s15, %s220_s6  ;;  %p226_p13 = scmp.lt.s32.totalorder %s220_s6, %s220_s6 }
  0x1c   :  { %p227_p0 = por %p226_p13, %p225_p12 }
  0x1e   :  { %p228_p1 = pnand %p227_p0, %p221_p11 }
  0x20   :  { %231 = shalt.err (!%p228_p1)
}
  0x21   :  { %s262_s0 = smov 128   ;;  %s263_s7 = smov 8  }
  0x22   :  { %32 = dma.hbm_to_vmem [thread:$0]  %s338_s1, 256, %s288_s15, [#allocation7], %s262_s0, %s262_s0, %s263_s7  }
  0x23   :  { %254 = dma.done.wait [#allocation4], 128  }
  0x24   :  { %255 = vsyncadd [#allocation4], 4294967168 }
  0x25   :  { %256 = dma.done.wait [#allocation7], 256  }
  0x26   :  { %257 = vsyncadd [#allocation7], 4294967040  ;;  %v264_v0 = vmov 0.0|0.0   ;;  %vm265_vm0 = vmmov 0   ;;  %v266_v1 = vmov 0.0   ;;  %vm58_vm1 = vcmask 261120  }
  0x27   :  { %176 = vmatprep.subr.bf16.mxu0 %v264_v0  ;;  %173 = vmatprep.mubr.msk.f32.mxu0 %vm265_vm0, %v266_v1  ;;  %vm52_vm2 = vcmask 130048   ;;  %v56_v2 = vld [vmem:[#allocation6] sm:$0xff]  ;;  %v57_v3 = vld [vmem:[#allocation6 + $0x8] sm:$0xff]  ;;  %vm178_vm3 = vmpackc.low %vm58_vm1, %vm58_vm1  ;;  %s267_s1 = smov [#allocation8]  }
  0x28   :  { %v177_v4 = vpack.c.bf16 %v57_v3, %v56_v2  ;;  %v162_v5 = vld [vmem:[%s339_s2] ss:$0 sm:$0xff]  ;;  %v55_v6 = vld [vmem:[#allocation3] sm:$0xff]  ;;  %s152_s12 = sshll.u32 %s267_s1, 4  ;;  %s153_s12 = int_to_ptr.vmem [resolvable:$true] %s152_s12 }
  0x29   :  { %53 = vst.msk [vmem:[#allocation2] sm:$0xff] %vm52_vm2, %v162_v5  ;;  %s232_s13 = scalar_lea.vmem %s153_s12, 128  ;;  %p237_p3 = scmp.lt.s32.totalorder %s153_s12, %s153_s12 }
  0x2a   :  { %179 = vmatpush3.bf16.xpose.msk.msra.mxu0 %vm178_vm3, %v177_v4  ;;  %p233_p2 = scmp.ne.s32.totalorder %s153_s12, %s232_s13  ;;  %p238_p4 = scmp.lt.s32.totalorder %s232_s13, %s232_s13 }
  0x2c   :  { %p239_p5 = por %p238_p4, %p237_p3 }
  0x2e   :  { %p240_p6 = pnand %p239_p5, %p233_p2 }
  0x30   :  { %v54_v7 = vld [vmem:[#allocation2] sm:$0xff] }
  0x31   :  { %174 = vmatmul.mubr.msk.f32.vlgmr.msra.gmra.mrb[0].mxu0 %vm58_vm1, %v55_v6 }
 0x104   :  { %v134_v8 = vpop.f32.mrb[0].mxu0 }
 0x105   :  { %v138_v9 = vadd.f32 %v134_v8, %v54_v7  ;;  %v175_v10 = vpop.f32.mrb[1].mxu0 }
 0x107   :  { %140 = vst.msk [vmem:[#allocation2] sm:$0xff] %vm52_vm2, %v138_v9 }
 0x10e   :  { %v144_v11 = vld [vmem:[#allocation2] sm:$0xff] }
 0x10f   :  { %145 = vst.msk [vmem:[#allocation8] sm:$0xff] %vm52_vm2, %v144_v11 }
 0x110   :  { %243 = shalt.err (!%p240_p6)
}
 0x111   :  { %s244_s15 = scalar_lea.hbm %s340_s3, 128 }
 0x112   :  { %p245_p7 = scmp.ne.s32.totalorder %s340_s3, %s244_s15  ;;  %p248_p8 = scmp.lt.u32.totalorder %s244_s15, %s340_s3 }
 0x114   :  { %p250_p9 = pnand %p248_p8, %p245_p7 }
 0x116   :  { %253 = shalt.err (!%p250_p9)
}
 0x117   :  { %155 = dma.vmem_to_hbm [thread:$0]  %s153_s12, 128, %s340_s3, [#allocation5]  }
 0x118   :  { %258 = dma.done.wait [#allocation5], 128  }
 0x119   :  { %259 = vsyncadd [#allocation5], 4294967168 }
 0x11a   :  { %159 = vsyncpa [#allocation4], 1 }
 0x11b   :  { %160 = vsyncpa [#allocation7], 1 }
 0x11c   :  { %161 = vsyncpa [#allocation5], 1 }

</bundles_post_ra>
